<compile_context>
chip_gen: v6e
topology: v6e:2x2x1
jax: 0.10.0
libtpu: 0.0.40
codegen_flags: <defaults>
</compile_context>

<pallas_src>
import jax
import jax.numpy as jnp
from jax.experimental import pallas as pl
from jax.experimental.pallas import tpu as pltpu


def ae_kernel(x_ref,
              w1_ref, b1_ref,
              w2_ref, b2_ref,
              w3_ref, b3_ref,
              w4_ref, b4_ref,
              o_ref):
    """Fused forward for one batch tile: 4x (Linear -> ReLU) entirely in VMEM.

    x_ref, w*_ref are bf16 (MXU operands); b*_ref are f32; accumulation,
    bias add and ReLU are f32. Layer 4 is zero-padded to a lane-dense width.
    """
    x = x_ref[...]  # bf16 [TB, F]

    h = jnp.dot(x, w1_ref[...], preferred_element_type=jnp.float32) + b1_ref[...]
    h = jnp.maximum(h, 0.0).astype(jnp.bfloat16)

    h = jnp.dot(h, w2_ref[...], preferred_element_type=jnp.float32) + b2_ref[...]
    h = jnp.maximum(h, 0.0).astype(jnp.bfloat16)

    h = jnp.dot(h, w3_ref[...], preferred_element_type=jnp.float32) + b3_ref[...]
    h = jnp.maximum(h, 0.0).astype(jnp.bfloat16)

    h = jnp.dot(h, w4_ref[...], preferred_element_type=jnp.float32) + b4_ref[...]
    h = jnp.maximum(h, 0.0)

    o_ref[...] = h.astype(o_ref.dtype)  # [TB, F_pad] lane-dense store


def ae_forward(x, params, *, block_b=256):
    """x: [B, F] float32; params: w1..w4 ([in,out] f32) and b1..b4 ([1,out] f32)."""
    B, F = x.shape

    # Batch tile: prefer 256 rows (fills 256-wide MXU rows, ~128 KB live f32
    # intermediates); fall back to the whole batch if it doesn't divide evenly.
    TB = block_b if (B >= block_b and B % block_b == 0) else B

    # Lane-dense output width (>= 128 and a multiple of 128).
    F_pad = max(128, pl.cdiv(F, 128) * 128)

    # bf16 MXU operands; biases stay f32. Zero-pad layer-4 output features.
    x_bf = x.astype(jnp.bfloat16)
    w1 = params["w1"].astype(jnp.bfloat16)
    w2 = params["w2"].astype(jnp.bfloat16)
    w3 = params["w3"].astype(jnp.bfloat16)
    w4 = (jnp.zeros((params["w4"].shape[0], F_pad), jnp.bfloat16)
          .at[:, :F].set(params["w4"].astype(jnp.bfloat16)))
    b4 = jnp.zeros((1, F_pad), jnp.float32).at[:, :F].set(params["b4"])

    args = (x_bf,
            w1, params["b1"],
            w2, params["b2"],
            w3, params["b3"],
            w4, b4)

    # Weights/biases: full-array blocks, constant index_map -> VMEM-resident
    # across all grid steps. x/out: stream TB rows per step.
    def resident(a):
        return pl.BlockSpec(a.shape, lambda i: (0,) * a.ndim)

    in_specs = [pl.BlockSpec((TB, F), lambda i: (i, 0))] + [resident(a) for a in args[1:]]
    out_spec = pl.BlockSpec((TB, F_pad), lambda i: (i, 0))

    out_full = pl.pallas_call(
        ae_kernel,
        out_shape=jax.ShapeDtypeStruct((B, F_pad), jnp.float32),
        grid_spec=pl.GridSpec(
            grid=(B // TB,),
            in_specs=in_specs,
            out_specs=out_spec,
        ),
        compiler_params=pltpu.CompilerParams(
            # Disjoint output tiles per batch block -> safe to shard across
            # TensorCores (2x on v7x, no-op on v5e/v6e).
            dimension_semantics=("parallel",),
            # Footprint: ~110 KB bf16 weights + ~2 KB biases + double-buffered
            # (TB x F) bf16 in / (TB x F_pad) f32 out tiles  << 32 MiB.
            vmem_limit_bytes=32 * 1024 * 1024,
        ),
    )(*args)

    # Drop the zero-padded output lanes.
    return out_full[:, :F]


def init_params(key, input_shape, hidden=128):
    """Deterministic init mimicking nn.Linear default U(-1/sqrt(fan_in), +)."""
    dims = [(input_shape, hidden), (hidden, hidden), (hidden, hidden), (hidden, input_shape)]
    params = {}
    for idx, (fan_in, fan_out) in enumerate(dims, start=1):
        key, kw, kb = jax.random.split(key, 3)
        bound = 1.0 / jnp.sqrt(jnp.float32(fan_in))
        params[f"w{idx}"] = jax.random.uniform(
            kw, (fan_in, fan_out), jnp.float32, minval=-bound, maxval=bound)
        params[f"b{idx}"] = jax.random.uniform(
            kb, (1, fan_out), jnp.float32, minval=-bound, maxval=bound)
    return params


def ae_reference_bf16(x, params):
    """Matched-precision reference (bf16 operands, f32 accumulation)."""
    h = x.astype(jnp.bfloat16)
    out = None
    for i in range(1, 5):
        w = params[f"w{i}"].astype(jnp.bfloat16)
        out = jnp.dot(h, w, preferred_element_type=jnp.float32) + params[f"b{i}"]
        out = jnp.maximum(out, 0.0)
        h = out.astype(jnp.bfloat16)
    return out


def ae_reference_f32(x, params):
    h = x
    for i in range(1, 5):
        h = jnp.maximum(h @ params[f"w{i}"] + params[f"b{i}"], 0.0)
    return h


if __name__ == "__main__":
    INPUT_SHAPE = 32   # kwargs['input_shape']
    BATCH = 512        # tiled as 2 grid steps of 256 rows

    key = jax.random.PRNGKey(0)
    key, kx = jax.random.split(key)
    x = jax.random.normal(kx, (BATCH, INPUT_SHAPE), jnp.float32)
    params = init_params(key, INPUT_SHAPE)

    out = ae_forward(x, params)
    out = jax.block_until_ready(out)

    assert out.shape == (BATCH, INPUT_SHAPE)

    # Primary check: matched bf16-operand / f32-accumulation reference.
    ref_bf = ae_reference_bf16(x, params)
    assert jnp.allclose(out, ref_bf, atol=1e-2, rtol=1e-2), "mismatch vs bf16 reference"

    # Sanity check vs pure-f32 math (loose tolerance for bf16 operand rounding).
    ref_f32 = ae_reference_f32(x, params)
    assert jnp.allclose(out, ref_f32, atol=1e-1, rtol=1e-1), "mismatch vs f32 reference"

    print("KERNEL_OK")
</pallas_src>

<mosaic_0001>
module attributes {stable_mosaic.version = 11 : i64} {
  func.func @ae_kernel(%arg0: i32, %arg1: memref<256x32xbf16, #tpu.memory_space<vmem>>, %arg2: memref<32x128xbf16, #tpu.memory_space<vmem>>, %arg3: memref<1x128xf32, #tpu.memory_space<vmem>>, %arg4: memref<128x128xbf16, #tpu.memory_space<vmem>>, %arg5: memref<1x128xf32, #tpu.memory_space<vmem>>, %arg6: memref<128x128xbf16, #tpu.memory_space<vmem>>, %arg7: memref<1x128xf32, #tpu.memory_space<vmem>>, %arg8: memref<128x128xbf16, #tpu.memory_space<vmem>>, %arg9: memref<1x128xf32, #tpu.memory_space<vmem>>, %arg10: memref<256x128xf32, #tpu.memory_space<vmem>>) attributes {dimension_semantics = [#tpu.dimension_semantics<parallel>], iteration_bounds = array<i64: 2>, scalar_prefetch = 0 : i64, scratch_operands = 0 : i64, tpu.core_type = #tpu.core_type<tc>, window_params = [{transform_indices = @transform_0, window_bounds = array<i64: 256, 32>}, {pipeline_mode = #tpu.pipeline_mode<synchronous>, transform_indices = @transform_1, window_bounds = array<i64: 32, 128>}, {pipeline_mode = #tpu.pipeline_mode<synchronous>, transform_indices = @transform_2, window_bounds = array<i64: 1, 128>}, {pipeline_mode = #tpu.pipeline_mode<synchronous>, transform_indices = @transform_3, window_bounds = array<i64: 128, 128>}, {pipeline_mode = #tpu.pipeline_mode<synchronous>, transform_indices = @transform_4, window_bounds = array<i64: 1, 128>}, {pipeline_mode = #tpu.pipeline_mode<synchronous>, transform_indices = @transform_5, window_bounds = array<i64: 128, 128>}, {pipeline_mode = #tpu.pipeline_mode<synchronous>, transform_indices = @transform_6, window_bounds = array<i64: 1, 128>}, {pipeline_mode = #tpu.pipeline_mode<synchronous>, transform_indices = @transform_7, window_bounds = array<i64: 128, 128>}, {pipeline_mode = #tpu.pipeline_mode<synchronous>, transform_indices = @transform_8, window_bounds = array<i64: 1, 128>}, {transform_indices = @transform_9, window_bounds = array<i64: 256, 128>}]} {
    %c0 = arith.constant 0 : index
    %c0_0 = arith.constant 0 : index
    %0 = vector.load %arg1[%c0, %c0_0] : memref<256x32xbf16, #tpu.memory_space<vmem>>, vector<256x32xbf16>
    %c0_1 = arith.constant 0 : index
    %c0_2 = arith.constant 0 : index
    %1 = vector.load %arg2[%c0_1, %c0_2] : memref<32x128xbf16, #tpu.memory_space<vmem>>, vector<32x128xbf16>
    %cst = arith.constant dense<0.000000e+00> : vector<256x128xf32>
    %2 = tpu.matmul %0, %1, %cst {dimension_numbers = #tpu.dot_dimension_numbers<[1], [0], [0], [1], [0, 0, 1, 1], [], []>} : vector<256x32xbf16>, vector<32x128xbf16>, vector<256x128xf32> -> vector<256x128xf32>
    %c0_3 = arith.constant 0 : index
    %c0_4 = arith.constant 0 : index
    %3 = vector.load %arg3[%c0_3, %c0_4] : memref<1x128xf32, #tpu.memory_space<vmem>>, vector<1x128xf32>
    %4 = vector.broadcast %3 : vector<1x128xf32> to vector<256x128xf32>
    %5 = arith.addf %2, %4 : vector<256x128xf32>
    %cst_5 = arith.constant 0.000000e+00 : f32
    %6 = vector.broadcast %cst_5 : f32 to vector<256x128xf32>
    %7 = arith.maximumf %5, %6 : vector<256x128xf32>
    %8 = arith.truncf %7 : vector<256x128xf32> to vector<256x128xbf16>
    %c0_6 = arith.constant 0 : index
    %c0_7 = arith.constant 0 : index
    %9 = vector.load %arg4[%c0_6, %c0_7] : memref<128x128xbf16, #tpu.memory_space<vmem>>, vector<128x128xbf16>
    %cst_8 = arith.constant dense<0.000000e+00> : vector<256x128xf32>
    %10 = tpu.matmul %8, %9, %cst_8 {dimension_numbers = #tpu.dot_dimension_numbers<[1], [0], [0], [1], [0, 0, 1, 1], [], []>} : vector<256x128xbf16>, vector<128x128xbf16>, vector<256x128xf32> -> vector<256x128xf32>
    %c0_9 = arith.constant 0 : index
    %c0_10 = arith.constant 0 : index
    %11 = vector.load %arg5[%c0_9, %c0_10] : memref<1x128xf32, #tpu.memory_space<vmem>>, vector<1x128xf32>
    %12 = vector.broadcast %11 : vector<1x128xf32> to vector<256x128xf32>
    %13 = arith.addf %10, %12 : vector<256x128xf32>
    %cst_11 = arith.constant 0.000000e+00 : f32
    %14 = vector.broadcast %cst_11 : f32 to vector<256x128xf32>
    %15 = arith.maximumf %13, %14 : vector<256x128xf32>
    %16 = arith.truncf %15 : vector<256x128xf32> to vector<256x128xbf16>
    %c0_12 = arith.constant 0 : index
    %c0_13 = arith.constant 0 : index
    %17 = vector.load %arg6[%c0_12, %c0_13] : memref<128x128xbf16, #tpu.memory_space<vmem>>, vector<128x128xbf16>
    %cst_14 = arith.constant dense<0.000000e+00> : vector<256x128xf32>
    %18 = tpu.matmul %16, %17, %cst_14 {dimension_numbers = #tpu.dot_dimension_numbers<[1], [0], [0], [1], [0, 0, 1, 1], [], []>} : vector<256x128xbf16>, vector<128x128xbf16>, vector<256x128xf32> -> vector<256x128xf32>
    %c0_15 = arith.constant 0 : index
    %c0_16 = arith.constant 0 : index
    %19 = vector.load %arg7[%c0_15, %c0_16] : memref<1x128xf32, #tpu.memory_space<vmem>>, vector<1x128xf32>
    %20 = vector.broadcast %19 : vector<1x128xf32> to vector<256x128xf32>
    %21 = arith.addf %18, %20 : vector<256x128xf32>
    %cst_17 = arith.constant 0.000000e+00 : f32
    %22 = vector.broadcast %cst_17 : f32 to vector<256x128xf32>
    %23 = arith.maximumf %21, %22 : vector<256x128xf32>
    %24 = arith.truncf %23 : vector<256x128xf32> to vector<256x128xbf16>
    %c0_18 = arith.constant 0 : index
    %c0_19 = arith.constant 0 : index
    %25 = vector.load %arg8[%c0_18, %c0_19] : memref<128x128xbf16, #tpu.memory_space<vmem>>, vector<128x128xbf16>
    %cst_20 = arith.constant dense<0.000000e+00> : vector<256x128xf32>
    %26 = tpu.matmul %24, %25, %cst_20 {dimension_numbers = #tpu.dot_dimension_numbers<[1], [0], [0], [1], [0, 0, 1, 1], [], []>} : vector<256x128xbf16>, vector<128x128xbf16>, vector<256x128xf32> -> vector<256x128xf32>
    %c0_21 = arith.constant 0 : index
    %c0_22 = arith.constant 0 : index
    %27 = vector.load %arg9[%c0_21, %c0_22] : memref<1x128xf32, #tpu.memory_space<vmem>>, vector<1x128xf32>
    %28 = vector.broadcast %27 : vector<1x128xf32> to vector<256x128xf32>
    %29 = arith.addf %26, %28 : vector<256x128xf32>
    %cst_23 = arith.constant 0.000000e+00 : f32
    %30 = vector.broadcast %cst_23 : f32 to vector<256x128xf32>
    %31 = arith.maximumf %29, %30 : vector<256x128xf32>
    %c0_24 = arith.constant 0 : index
    %c0_25 = arith.constant 0 : index
    %32 = vector.load %arg10[%c0_24, %c0_25] : memref<256x128xf32, #tpu.memory_space<vmem>>, vector<256x128xf32>
    tpu.vector_store %arg10[%c0_24, %c0_25], %31 {strides = array<i32>} : memref<256x128xf32, #tpu.memory_space<vmem>>, vector<256x128xf32>,
    return
  }
  func.func @transform_0(%arg0: i32) -> (i32, i32) {
    %c0_i32 = arith.constant 0 : i32
    %c0_i32_0 = arith.constant 0 : i32
    return %arg0, %c0_i32 : i32, i32
  }
  func.func @transform_1(%arg0: i32) -> (i32, i32) {
    %c0_i32 = arith.constant 0 : i32
    %c0_i32_0 = arith.constant 0 : i32
    %c0_i32_1 = arith.constant 0 : i32
    return %c0_i32, %c0_i32_0 : i32, i32
  }
  func.func @transform_2(%arg0: i32) -> (i32, i32) {
    %c0_i32 = arith.constant 0 : i32
    %c0_i32_0 = arith.constant 0 : i32
    %c0_i32_1 = arith.constant 0 : i32
    return %c0_i32, %c0_i32_0 : i32, i32
  }
  func.func @transform_3(%arg0: i32) -> (i32, i32) {
    %c0_i32 = arith.constant 0 : i32
    %c0_i32_0 = arith.constant 0 : i32
    %c0_i32_1 = arith.constant 0 : i32
    return %c0_i32, %c0_i32_0 : i32, i32
  }
  func.func @transform_4(%arg0: i32) -> (i32, i32) {
    %c0_i32 = arith.constant 0 : i32
    %c0_i32_0 = arith.constant 0 : i32
    %c0_i32_1 = arith.constant 0 : i32
    return %c0_i32, %c0_i32_0 : i32, i32
  }
  func.func @transform_5(%arg0: i32) -> (i32, i32) {
    %c0_i32 = arith.constant 0 : i32
    %c0_i32_0 = arith.constant 0 : i32
    %c0_i32_1 = arith.constant 0 : i32
    return %c0_i32, %c0_i32_0 : i32, i32
  }
  func.func @transform_6(%arg0: i32) -> (i32, i32) {
    %c0_i32 = arith.constant 0 : i32
    %c0_i32_0 = arith.constant 0 : i32
    %c0_i32_1 = arith.constant 0 : i32
    return %c0_i32, %c0_i32_0 : i32, i32
  }
  func.func @transform_7(%arg0: i32) -> (i32, i32) {
    %c0_i32 = arith.constant 0 : i32
    %c0_i32_0 = arith.constant 0 : i32
    %c0_i32_1 = arith.constant 0 : i32
    return %c0_i32, %c0_i32_0 : i32, i32
  }
  func.func @transform_8(%arg0: i32) -> (i32, i32) {
    %c0_i32 = arith.constant 0 : i32
    %c0_i32_0 = arith.constant 0 : i32
    %c0_i32_1 = arith.constant 0 : i32
    return %c0_i32, %c0_i32_0 : i32, i32
  }
  func.func @transform_9(%arg0: i32) -> (i32, i32) {
    %c0_i32 = arith.constant 0 : i32
    %c0_i32_0 = arith.constant 0 : i32
    return %arg0, %c0_i32 : i32, i32
  }
}

</mosaic_0001>

<bundles_post_ra>
// kernel: tpu_custom_call.1
= control target key start
LH: loop header
LB: loop body
LE: loop exit
PB: predicated region body
PF: predicated region fallthrough
CT: control target
= control target key end

     0   :  { %14 = vsyncpa [#allocation3], 0  ;;  %s2637_s0 = inlined_call_operand.vmem [shape: bf16[512,32], index: 0, kind: input, shape index: {}]   ;;  %s2638_s1 = inlined_call_operand.vmem [shape: bf16[32,128], index: 1, kind: input, shape index: {}]   ;;  %s2639_s2 = inlined_call_operand.vmem [shape: f32[1,128], index: 2, kind: input, shape index: {}]   ;;  %s2640_s3 = inlined_call_operand.vmem [shape: bf16[128,128], index: 3, kind: input, shape index: {}]   ;;  %s2641_s4 = inlined_call_operand.vmem [shape: f32[1,128], index: 4, kind: input, shape index: {}]   ;;  %s2642_s5 = inlined_call_operand.vmem [shape: bf16[128,128], index: 5, kind: input, shape index: {}]   ;;  %s2643_s6 = inlined_call_operand.vmem [shape: f32[1,128], index: 6, kind: input, shape index: {}]   ;;  %s2644_s7 = inlined_call_operand.vmem [shape: bf16[128,128], index: 7, kind: input, shape index: {}]   ;;  %s2645_s8 = inlined_call_operand.vmem [shape: f32[1,128], index: 8, kind: input, shape index: {}]   ;;  %s2646_s9 = inlined_call_operand.hbm [shape: f32[512,128], index: 9, kind: output, shape index: {}]  }
   0x1   :  { %16 = vsyncpa [#allocation3 + $0x1], 0  ;;  %s2219_s30 = smov 0   ;;  %s2221_s10 = smov 0  }
   0x2   :  { %s2223_s11 = smov 0   ;;  %s2225_s12 = smov 0  }
   0x3 LB: > { %s2240_s13 = sadd.s32 4294967295, %s2164_s12   ;;  %s1660_s14 = sadd.s32 4294967294, %s2164_s12   ;;  %s2164_s12 = sphi %s2225_s12, %s2652_s12   ;;  %s2160_s11 = sphi %s2223_s11, %s2651_s11   ;;  %s2156_s10 = sphi %s2221_s10, %s2650_s10   ;;  %s2152_s30 = sphi %s2219_s30, %s2649_s30  }
   0x4   : > { %s2244_s15 = sadd.s32 1, %s2164_s12   ;;  %s223_s16 = sadd.s32 1, %s2160_s11 }
   0x5   : > { %s220_s17 = ssub.s32 %s2164_s12, %s2244_s15  ;;  %p233_p0 = scmp.ne.s32.totalorder %s2160_s11, %s2156_s10 }
   0x6   : > { %p221_p1 = scmp.eq.s32.totalorder %s220_s17, 0  ;;  %p234_p2 = scmp.eq.s32.totalorder %s2240_s13, 1 }
   0x7   : > { %p239_p3 = scmp.ne.s32.totalorder %s2156_s10, %s2152_s30  ;;  %p240_p4 = scmp.eq.s32.totalorder %s1660_s14, 1 }
   0x8   : > { %s2255_s18 = scalar_select %p221_p1, %s2160_s11, %s223_s16  }
   0x9   : > { %p2257_p5 = por %p234_p2, %p233_p0  ;;  %p2261_p6 = por %p240_p4, %p239_p3 }
   0xa   : > { %p1663_p7 = scmp.ge.s32.totalorder %s2164_s12, 1  ;;  %p291_p8 = scmp.lt.s32.totalorder %s2164_s12, 3 }
   0xc   : > { %p292_p9 = pnand %p1663_p7, %p291_p8 }
   0xd   : > { %s1665_s23 = sshll.u32 (!%p292_p9), %s2240_s13, 5  ;;  %s1734_s29 = sshll.u32 (!%p292_p9), %s2240_s13, 12 }
   0xe   : > { %295 = sbr.rel (%p292_p9) target bundleno = 919 (0x397), region = 56  ;;  %p328_p10 = scmp.lt.s32.totalorder (!%p292_p9), %s1665_s23, 63 }
   0xf   : > { %s2589_s22 = scalar_lea.hbm (!%p292_p9), %s2646_s9, %s1734_s29  ;;  %s2166_s24 = smov (!%p292_p9), [#allocation2]  }
  0x10   : > { %s2108_s25 = sshll.u32 (!%p292_p9), %s2166_s24, 4  ;;  %s2109_s25 = int_to_ptr.vmem [resolvable:$false] %s2108_s25 }
  0x11   : > { %s2110_s26 = scalar_lea.vmem (!%p292_p9), %s2109_s25, 8192 }
  0x13   : > { %v2062_v0 = vld [vmem:[%s2638_s1 + $0x8] sm:$0xff]   ;;  %v2063_v1 = vld [vmem:[%s2638_s1] sm:$0xff]   ;;  %v2080_v2 = vld [vmem:[%s2640_s3 + $0x38] sm:$0xff]   ;;  %s2654_s23 = smov (!%p328_p10, %s1665_s23), 63  ;;  %vm470_vm0 = vcmask 261120  }
  0x14   : > { %1825 = vmatprep.subr.bf16.mxu0 %v2062_v0  ;;  %v2081_v3 = vld [vmem:[%s2640_s3 + $0x30] sm:$0xff]   ;;  %1861 = vmatprep.subr.bf16.mxu1 %v2080_v2  ;;  %s1666_s14 = sshll.u32 %s2654_s23, 2  ;;  %v2082_v4 = vld [vmem:[%s2640_s3 + $0x28] sm:$0xff]   ;;  %v2083_v8 = vld [vmem:[%s2640_s3 + $0x20] sm:$0xff]   ;;  %s324_s23 = sand.u32 1, %s2156_s10  }
  0x15   : > { %1826 = vmatpush3.bf16.msra.mxu0 %v2062_v0  ;;  %1862 = vmatpush3.bf16.msra.mxu1 %v2080_v2  ;;  %s2283_s21 = scalar_lea.vmem %s2637_s0, %s1666_s14  ;;  %v2084_v9 = vld [vmem:[%s2640_s3 + $0x18] sm:$0xff]   ;;  %v2085_v23 = vld [vmem:[%s2640_s3 + $0x10] sm:$0xff]   ;;  %v2086_v24 = vld [vmem:[%s2640_s3 + $0x8] sm:$0xff]   ;;  %s1664_s27 = sshll.u32 %s324_s23, 8 }
  0x16   : > { %1827 = vmatprep.subr.bf16.mxu0 %v2063_v1  ;;  %1863 = vmatprep.subr.bf16.mxu1 %v2081_v3  ;;  %v2064_v5 = vld [vmem:[%s2283_s21] sm:$0xff]   ;;  %v2065_v6 = vld [vmem:[%s2283_s21 + $0x8] sm:$0xff]   ;;  %v2066_v7 = vld [vmem:[%s2283_s21 + $0x10] sm:$0xff]   ;;  %s2522_s28 = scalar_lea.vmem [#allocation2], %s1664_s27  ;;  %s2597_s13 = scalar_lea.sflag [#allocation3], %s324_s23 }
  0x17   : > { %1829 = vmatprep.mubr.msk.bf16.mxu0 %vm470_vm0, %v2064_v5  ;;  %v2067_v10 = vld [vmem:[%s2283_s21 + $0x18] sm:$0xff]   ;;  %v2068_v11 = vld [vmem:[%s2283_s21 + $0x20] sm:$0xff]   ;;  %v2069_v12 = vld [vmem:[%s2283_s21 + $0x28] sm:$0xff]   ;;  %s1598_s14 = sshll.u32 %s2522_s28, 4  ;;  %s2591_s14 = int_to_ptr.vmem [resolvable:$true] %s1598_s14 }
  0x18   : > { %v2070_v13 = vld [vmem:[%s2283_s21 + $0x30] sm:$0xff]   ;;  %v2071_v14 = vld [vmem:[%s2283_s21 + $0x38] sm:$0xff]   ;;  %v2072_v15 = vld [vmem:[%s2283_s21 + $0x40] sm:$0xff]   ;;  %p2111_p0 = scmp.lt.s32.totalorder %s2591_s14, %s2109_s25 }
  0x19   : > { %1828 = vmatpush3.bf16.msra.mxu0 %v2063_v1  ;;  %1864 = vmatpush3.bf16.msra.mxu1 %v2081_v3  ;;  %v2073_v16 = vld [vmem:[%s2283_s21 + $0x48] sm:$0xff]   ;;  %v2074_v17 = vld [vmem:[%s2283_s21 + $0x50] sm:$0xff]   ;;  %v2075_v18 = vld [vmem:[%s2283_s21 + $0x58] sm:$0xff]  }
  0x1a   : > { %1865 = vmatprep.subr.bf16.mxu1 %v2082_v4  ;;  %v2076_v19 = vld [vmem:[%s2283_s21 + $0x60] sm:$0xff]   ;;  %v2077_v20 = vld [vmem:[%s2283_s21 + $0x68] sm:$0xff]   ;;  %v2078_v21 = vld [vmem:[%s2283_s21 + $0x70] sm:$0xff]  }
  0x1b   : > { %v2079_v22 = vld [vmem:[%s2283_s21 + $0x78] sm:$0xff]   ;;  %v2087_v25 = vld [vmem:[%s2640_s3] sm:$0xff]   ;;  %v2089_v27 = vld [vmem:[%s2642_s5 + $0x30] sm:$0xff]   ;;  %s2104_s21 = scalar_lea.vmem %s2591_s14, 4096 }
  0x1c   : > { %1830 = vmatmul.mubr.msk.bf16.vlgmr.msra.gmra.mxu0 %vm470_vm0, %v2065_v6  ;;  %v2088_v26 = vld [vmem:[%s2642_s5 + $0x38] sm:$0xff]   ;;  %v2090_v28 = vld [vmem:[%s2642_s5 + $0x28] sm:$0xff]   ;;  %v2091_v29 = vld [vmem:[%s2642_s5 + $0x20] sm:$0xff]   ;;  %p2105_p11 = scmp.ne.s32.totalorder %s2591_s14, %s2104_s21  ;;  %p2112_p1 = scmp.lt.s32.totalorder %s2110_s26, %s2104_s21 }
  0x1d   : > { %1833 = vmatprep.mubr.msk.bf16.mxu0 %vm470_vm0, %v2066_v7  ;;  %1866 = vmatpush3.bf16.msra.mxu1 %v2082_v4  ;;  %v2092_v30 = vld [vmem:[%s2642_s5 + $0x18] sm:$0xff]   ;;  %v2093_v31 = vld [vmem:[%s2642_s5 + $0x10] sm:$0xff]   ;;  %v2094_v32 = vld [vmem:[%s2642_s5 + $0x8] sm:$0xff]  }
  0x1e   : > { %1867 = vmatprep.subr.bf16.mxu1 %v2083_v8  ;;  %1909 = vmatprep.subr.bf16.mxu0 %v2088_v26  ;;  %v2359_v35 = vld [vmem:[%s2639_s2] ss:$0 sm:$0xff]  ;;  %p2106_p12 = pnand %p2105_p11, %p2257_p5  ;;  %p2113_p2 = por %p2112_p1, %p2111_p0 }
  0x1f   : > { %1910 = vmatpush3.bf16.msra.mxu0 %v2088_v26 }
  0x20   : > { %1911 = vmatprep.subr.bf16.mxu0 %v2089_v27  ;;  %p2107_p13 = pneg %p2106_p12 }
  0x21   : > { %1868 = vmatpush3.bf16.msra.mxu1 %v2083_v8 }
  0x22   : > { %1869 = vmatprep.subr.bf16.mxu1 %v2084_v9  ;;  %p2114_p3 = pnand %p2113_p2, %p2107_p13 }
  0x23   : > { %1912 = vmatpush3.bf16.msra.mxu0 %v2089_v27 }
  0x24   : > { %1834 = vmatmul.mubr.msk.bf16.gmra.mxu0 %vm470_vm0, %v2067_v10  ;;  %1913 = vmatprep.subr.bf16.mxu0 %v2090_v28 }
  0x25   : > { %1837 = vmatprep.mubr.msk.bf16.mxu0 %vm470_vm0, %v2068_v11  ;;  %1870 = vmatpush3.bf16.msra.mxu1 %v2084_v9 }
  0x26   : > { %1871 = vmatprep.subr.bf16.mxu1 %v2085_v23 }
  0x27   : > { %1914 = vmatpush3.bf16.msra.mxu0 %v2090_v28 }
  0x28   : > { %1915 = vmatprep.subr.bf16.mxu0 %v2091_v29 }
  0x29   : > { %1872 = vmatpush3.bf16.msra.mxu1 %v2085_v23 }
  0x2a   : > { %1873 = vmatprep.subr.bf16.mxu1 %v2086_v24 }
  0x2b   : > { %1916 = vmatpush3.bf16.msra.mxu0 %v2091_v29 }
  0x2c   : > { %1838 = vmatmul.mubr.msk.bf16.gmra.mxu0 %vm470_vm0, %v2069_v12  ;;  %1917 = vmatprep.subr.bf16.mxu0 %v2092_v30 }
  0x2d   : > { %1841 = vmatprep.mubr.msk.bf16.mxu0 %vm470_vm0, %v2070_v13  ;;  %1874 = vmatpush3.bf16.msra.mxu1 %v2086_v24 }
  0x2e   : > { %1875 = vmatprep.subr.bf16.mxu1 %v2087_v25 }
  0x2f   : > { %1918 = vmatpush3.bf16.msra.mxu0 %v2092_v30 }
  0x30   : > { %1919 = vmatprep.subr.bf16.mxu0 %v2093_v31 }
  0x31   : > { %1876 = vmatpush3.bf16.msra.mxu1 %v2087_v25 }
  0x33   : > { %1920 = vmatpush3.bf16.msra.mxu0 %v2093_v31 }
  0x34   : > { %1842 = vmatmul.mubr.msk.bf16.gmra.mxu0 %vm470_vm0, %v2071_v14  ;;  %1921 = vmatprep.subr.bf16.mxu0 %v2094_v32 }
  0x35   : > { %1845 = vmatprep.mubr.msk.bf16.mxu0 %vm470_vm0, %v2072_v15 }
  0x37   : > { %1922 = vmatpush3.bf16.msra.mxu0 %v2094_v32 }
  0x3c   : > { %1846 = vmatmul.mubr.msk.bf16.gmra.mxu0 %vm470_vm0, %v2073_v16 }
  0x3d   : > { %1849 = vmatprep.mubr.msk.bf16.mxu0 %vm470_vm0, %v2074_v17 }
  0x44   : > { %1850 = vmatmul.mubr.msk.bf16.gmra.mxu0 %vm470_vm0, %v2075_v18 }
  0x45   : > { %1853 = vmatprep.mubr.msk.bf16.mxu0 %vm470_vm0, %v2076_v19 }
  0x4c   : > { %1854 = vmatmul.mubr.msk.bf16.gmra.mxu0 %vm470_vm0, %v2077_v20 }
  0x4d   : > { %1857 = vmatprep.mubr.msk.bf16.mxu0 %vm470_vm0, %v2078_v21 }
  0x54   : > { %1858 = vmatmul.mubr.msk.bf16.gmra.mxu0 %vm470_vm0, %v2079_v22 }
  0xdc   : > { %v1831_v33 = vpop.f32.mrf.mxu0 }
  0xdd   : > { %v562_v39 = vadd.f32 %v1831_v33, %v2359_v35 }
  0xde   : > { %v553_v34 = vpop.f32.mrf.mxu0 }
  0xdf   : > { %v554_v37 = vadd.f32 %v2359_v35, %v553_v34  ;;  %v682_v46 = vmax.f32 %v562_v39, 0.0 }
  0xe0   : > { %v1832_v36 = vpop.f32.mrf.mxu0 }
  0xe1   : > { %v565_v38 = vadd.f32 %v1832_v36, %v2359_v35  ;;  %v680_v44 = vmax.f32 %v554_v37, 0.0 }
  0xe2   : > { %v556_v40 = vpop.f32.mrf.mxu0 }
  0xe3   : > { %v557_v41 = vadd.f32 %v2359_v35, %v556_v40  ;;  %v683_v42 = vmax.f32 %v565_v38, 0.0 }
  0xe4   : > { %v1835_v43 = vpop.f32.mrf.mxu0 }
  0xe5   : > { %v681_v45 = vmax.f32 %v557_v41, 0.0  ;;  %v713_v49 = vpack.c.bf16 %v683_v42, %v682_v46  ;;  %v578_v53 = vadd.f32 %v1835_v43, %v2359_v35 }
  0xe6   : > { %v569_v47 = vpop.f32.mrf.mxu0 }
  0xe7   : > { %v712_v48 = vpack.c.bf16 %v681_v45, %v680_v44  ;;  %v570_v51 = vadd.f32 %v2359_v35, %v569_v47  ;;  %v686_v60 = vmax.f32 %v578_v53, 0.0 }
  0xe8   : > { %v1836_v50 = vpop.f32.mrf.mxu0 }
  0xe9   : > { %v581_v52 = vadd.f32 %v1836_v50, %v2359_v35  ;;  %1877 = vmatprep.mubr.bf16.mxu1 %v712_v48  ;;  %v684_v58 = vmax.f32 %v570_v51, 0.0 }
  0xea   : > { %v572_v54 = vpop.f32.mrf.mxu0  ;;  %1878 = vmatmul.mubr.bf16.vlgmr.msra.gmra.mxu1 %v713_v49 }
  0xeb   : > { %v573_v55 = vadd.f32 %v2359_v35, %v572_v54  ;;  %v687_v56 = vmax.f32 %v581_v52, 0.0 }
  0xec   : > { %v1839_v57 = vpop.f32.mrf.mxu0 }
  0xed   : > { %v685_v59 = vmax.f32 %v573_v55, 0.0  ;;  %v715_v63 = vpack.c.bf16 %v687_v56, %v686_v60  ;;  %v594_v3 = vadd.f32 %v1839_v57, %v2359_v35 }
  0xee   : > { %v585_v61 = vpop.f32.mrf.mxu0 }
  0xef   : > { %v714_v62 = vpack.c.bf16 %v685_v59, %v684_v58  ;;  %v586_v1 = vadd.f32 %v2359_v35, %v585_v61  ;;  %v690_v10 = vmax.f32 %v594_v3, 0.0 }
  0xf0   : > { %v1840_v0 = vpop.f32.mrf.mxu0 }
  0xf1   : > { %v597_v2 = vadd.f32 %v1840_v0, %v2359_v35  ;;  %1881 = vmatprep.mubr.bf16.mxu1 %v714_v62  ;;  %v688_v8 = vmax.f32 %v586_v1, 0.0 }
  0xf2   : > { %v588_v4 = vpop.f32.mrf.mxu0  ;;  %1882 = vmatmul.mubr.bf16.gmra.mxu1 %v715_v63 }
  0xf3   : > { %v589_v5 = vadd.f32 %v2359_v35, %v588_v4  ;;  %v691_v6 = vmax.f32 %v597_v2, 0.0 }
  0xf4   : > { %v1843_v7 = vpop.f32.mrf.mxu0 }
  0xf5   : > { %v689_v9 = vmax.f32 %v589_v5, 0.0  ;;  %v717_v13 = vpack.c.bf16 %v691_v6, %v690_v10  ;;  %v610_v17 = vadd.f32 %v1843_v7, %v2359_v35 }
  0xf6   : > { %v601_v11 = vpop.f32.mrf.mxu0 }
  0xf7   : > { %v716_v12 = vpack.c.bf16 %v689_v9, %v688_v8  ;;  %v602_v15 = vadd.f32 %v2359_v35, %v601_v11  ;;  %v694_v24 = vmax.f32 %v610_v17, 0.0 }
  0xf8   : > { %v1844_v14 = vpop.f32.mrf.mxu0 }
  0xf9   : > { %v613_v16 = vadd.f32 %v1844_v14, %v2359_v35  ;;  %1885 = vmatprep.mubr.bf16.mxu1 %v716_v12  ;;  %v692_v22 = vmax.f32 %v602_v15, 0.0 }
  0xfa   : > { %v604_v18 = vpop.f32.mrf.mxu0  ;;  %1886 = vmatmul.mubr.bf16.gmra.mxu1 %v717_v13 }
  0xfb   : > { %v605_v19 = vadd.f32 %v2359_v35, %v604_v18  ;;  %v695_v20 = vmax.f32 %v613_v16, 0.0 }
  0xfc   : > { %v1847_v21 = vpop.f32.mrf.mxu0 }
  0xfd   : > { %v693_v23 = vmax.f32 %v605_v19, 0.0  ;;  %v719_v27 = vpack.c.bf16 %v695_v20, %v694_v24  ;;  %v626_v31 = vadd.f32 %v1847_v21, %v2359_v35  ;;  %v2095_v19 = vld [vmem:[%s2642_s5] sm:$0xff]   ;;  %v2096_v20 = vld [vmem:[%s2644_s7 + $0x38] sm:$0xff]   ;;  %v2098_v21 = vld [vmem:[%s2644_s7 + $0x28] sm:$0xff]  }
  0xfe   : > { %v617_v25 = vpop.f32.mrf.mxu0  ;;  %1923 = vmatprep.subr.bf16.mxu0 %v2095_v19  ;;  %2005 = vmatprep.subr.bf16.mxu1 %v2096_v20  ;;  %v2421_v24 = vld [vmem:[%s2644_s7 + $0x10] sm:$0xff]  }
  0xff   : > { %v718_v26 = vpack.c.bf16 %v693_v23, %v692_v22  ;;  %v618_v29 = vadd.f32 %v2359_v35, %v617_v25  ;;  %v698_v39 = vmax.f32 %v626_v31, 0.0  ;;  %1924 = vmatpush3.bf16.msra.mxu0 %v2095_v19  ;;  %2013 = vmatpush3.bf16.msra.mxu1 %v2096_v20  ;;  %v2408_v22 = vld [vmem:[%s2644_s7 + $0x20] sm:$0xff]   ;;  %v2414_v23 = vld [vmem:[%s2644_s7 + $0x18] sm:$0xff]  }
 0x100   : > { %v1848_v28 = vpop.f32.mrf.mxu0  ;;  %1957 = vmatprep.subr.bf16.mxu0 %v2096_v20 }
 0x101   : > { %v629_v30 = vadd.f32 %v1848_v28, %v2359_v35  ;;  %1889 = vmatprep.mubr.bf16.mxu1 %v718_v26  ;;  %v696_v37 = vmax.f32 %v618_v29, 0.0 }
 0x102   : > { %v620_v32 = vpop.f32.mrf.mxu0  ;;  %1890 = vmatmul.mubr.bf16.gmra.mxu1 %v719_v27  ;;  %v2429_v27 = vld [vmem:[%s2641_s4] ss:$0 sm:$0xff] }
 0x103   : > { %v621_v33 = vadd.f32 %v2359_v35, %v620_v32  ;;  %v699_v34 = vmax.f32 %v629_v30, 0.0 }
 0x104   : > { %v1851_v36 = vpop.f32.mrf.mxu0 }
 0x105   : > { %v697_v38 = vmax.f32 %v621_v33, 0.0  ;;  %v721_v42 = vpack.c.bf16 %v699_v34, %v698_v39  ;;  %v642_v46 = vadd.f32 %v1851_v36, %v2359_v35 }
 0x106   : > { %v633_v40 = vpop.f32.mrf.mxu0 }
 0x107   : > { %v720_v41 = vpack.c.bf16 %v697_v38, %v696_v37  ;;  %v634_v44 = vadd.f32 %v2359_v35, %v633_v40  ;;  %v702_v53 = vmax.f32 %v642_v46, 0.0 }
 0x108   : > { %v1852_v43 = vpop.f32.mrf.mxu0 }
 0x109   : > { %v645_v45 = vadd.f32 %v1852_v43, %v2359_v35  ;;  %1893 = vmatprep.mubr.bf16.mxu1 %v720_v41  ;;  %v700_v51 = vmax.f32 %v634_v44, 0.0 }
 0x10a   : > { %v636_v47 = vpop.f32.mrf.mxu0  ;;  %1894 = vmatmul.mubr.bf16.gmra.mxu1 %v721_v42 }
 0x10b   : > { %v637_v48 = vadd.f32 %v2359_v35, %v636_v47  ;;  %v703_v49 = vmax.f32 %v645_v45, 0.0 }
 0x10c   : > { %v1855_v50 = vpop.f32.mrf.mxu0 }
 0x10d   : > { %v701_v52 = vmax.f32 %v637_v48, 0.0  ;;  %v723_v56 = vpack.c.bf16 %v703_v49, %v702_v53  ;;  %v658_v60 = vadd.f32 %v1855_v50, %v2359_v35 }
 0x10e   : > { %v649_v54 = vpop.f32.mrf.mxu0 }
 0x10f   : > { %v722_v55 = vpack.c.bf16 %v701_v52, %v700_v51  ;;  %v650_v58 = vadd.f32 %v2359_v35, %v649_v54  ;;  %v706_v3 = vmax.f32 %v658_v60, 0.0 }
 0x110   : > { %v1856_v57 = vpop.f32.mrf.mxu0 }
 0x111   : > { %v661_v59 = vadd.f32 %v1856_v57, %v2359_v35  ;;  %1897 = vmatprep.mubr.bf16.mxu1 %v722_v55  ;;  %v704_v1 = vmax.f32 %v650_v58, 0.0 }
 0x112   : > { %v652_v61 = vpop.f32.mrf.mxu0  ;;  %1898 = vmatmul.mubr.bf16.gmra.mxu1 %v723_v56 }
 0x113   : > { %v653_v62 = vadd.f32 %v2359_v35, %v652_v61  ;;  %v707_v63 = vmax.f32 %v661_v59, 0.0 }
 0x114   : > { %v1859_v0 = vpop.f32.mrf.mxu0 }
 0x115   : > { %v705_v2 = vmax.f32 %v653_v62, 0.0  ;;  %v725_v6 = vpack.c.bf16 %v707_v63, %v706_v3  ;;  %v674_v10 = vadd.f32 %v1859_v0, %v2359_v35 }
 0x116   : > { %v665_v4 = vpop.f32.mrf.mxu0 }
 0x117   : > { %v724_v5 = vpack.c.bf16 %v705_v2, %v704_v1  ;;  %v666_v8 = vadd.f32 %v2359_v35, %v665_v4  ;;  %v710_v16 = vmax.f32 %v674_v10, 0.0 }
 0x118   : > { %v1860_v7 = vpop.f32.mrf.mxu0 }
 0x119   : > { %v677_v9 = vadd.f32 %v1860_v7, %v2359_v35  ;;  %1901 = vmatprep.mubr.bf16.mxu1 %v724_v5  ;;  %v708_v14 = vmax.f32 %v666_v8, 0.0 }
 0x11a   : > { %v668_v11 = vpop.f32.mrf.mxu0  ;;  %1902 = vmatmul.mubr.bf16.gmra.mxu1 %v725_v6 }
 0x11b   : > { %v669_v12 = vadd.f32 %v2359_v35, %v668_v11  ;;  %v711_v13 = vmax.f32 %v677_v9, 0.0  ;;  %v2097_v35 = vld [vmem:[%s2644_s7 + $0x30] sm:$0xff]  }
 0x11c   : > { %2006 = vmatprep.subr.bf16.mxu1 %v2097_v35 }
 0x11d   : > { %v709_v15 = vmax.f32 %v669_v12, 0.0  ;;  %v727_v18 = vpack.c.bf16 %v711_v13, %v710_v16  ;;  %2014 = vmatpush3.bf16.msra.mxu1 %v2097_v35 }
 0x11e   : > { %2007 = vmatprep.subr.bf16.mxu1 %v2098_v21 }
 0x11f   : > { %v726_v17 = vpack.c.bf16 %v709_v15, %v708_v14 }
 0x121   : > { %1905 = vmatprep.mubr.bf16.mxu1 %v726_v17  ;;  %2015 = vmatpush3.bf16.msra.mxu1 %v2098_v21 }
 0x122   : > { %1906 = vmatmul.mubr.bf16.gmra.mxu1 %v727_v18  ;;  %2008 = vmatprep.subr.bf16.mxu1 %v2408_v22 }
 0x125   : > { %2016 = vmatpush3.bf16.msra.mxu1 %v2408_v22 }
 0x126   : > { %2009 = vmatprep.subr.bf16.mxu1 %v2414_v23 }
 0x129   : > { %2017 = vmatpush3.bf16.msra.mxu1 %v2414_v23 }
 0x12a   : > { %2010 = vmatprep.subr.bf16.mxu1 %v2421_v24 }
 0x12d   : > { %2018 = vmatpush3.bf16.msra.mxu1 %v2421_v24 }
 0x1aa   : > { %v1879_v25 = vpop.f32.mrf.mxu1 }
 0x1ab   : > { %v842_v31 = vadd.f32 %v1879_v25, %v2429_v27 }
 0x1ac   : > { %v833_v26 = vpop.f32.mrf.mxu1 }
 0x1ad   : > { %v834_v29 = vadd.f32 %v2429_v27, %v833_v26  ;;  %v962_v39 = vmax.f32 %v842_v31, 0.0 }
 0x1ae   : > { %v1880_v28 = vpop.f32.mrf.mxu1 }
 0x1af   : > { %v845_v30 = vadd.f32 %v1880_v28, %v2429_v27  ;;  %v960_v37 = vmax.f32 %v834_v29, 0.0 }
 0x1b0   : > { %v836_v32 = vpop.f32.mrf.mxu1 }
 0x1b1   : > { %v837_v33 = vadd.f32 %v2429_v27, %v836_v32  ;;  %v963_v34 = vmax.f32 %v845_v30, 0.0 }
 0x1b2   : > { %v1883_v36 = vpop.f32.mrf.mxu1 }
 0x1b3   : > { %v961_v38 = vmax.f32 %v837_v33, 0.0  ;;  %v993_v42 = vpack.c.bf16 %v963_v34, %v962_v39  ;;  %v858_v46 = vadd.f32 %v1883_v36, %v2429_v27 }
 0x1b4   : > { %v849_v40 = vpop.f32.mrf.mxu1 }
 0x1b5   : > { %v992_v41 = vpack.c.bf16 %v961_v38, %v960_v37  ;;  %v850_v44 = vadd.f32 %v2429_v27, %v849_v40  ;;  %v966_v53 = vmax.f32 %v858_v46, 0.0 }
 0x1b6   : > { %v1884_v43 = vpop.f32.mrf.mxu1 }
 0x1b7   : > { %v861_v45 = vadd.f32 %v1884_v43, %v2429_v27  ;;  %1925 = vmatprep.mubr.bf16.mxu0 %v992_v41  ;;  %v964_v51 = vmax.f32 %v850_v44, 0.0 }
 0x1b8   : > { %v852_v47 = vpop.f32.mrf.mxu1  ;;  %1926 = vmatmul.mubr.bf16.vlgmr.msra.gmra.mxu0 %v993_v42 }
 0x1b9   : > { %v853_v48 = vadd.f32 %v2429_v27, %v852_v47  ;;  %1958 = vmatpush3.bf16.msra.mxu0 %v2096_v20  ;;  %v967_v49 = vmax.f32 %v861_v45, 0.0 }
 0x1ba   : > { %v1887_v50 = vpop.f32.mrf.mxu1  ;;  %1959 = vmatprep.subr.bf16.mxu0 %v2097_v35 }
 0x1bb   : > { %v965_v52 = vmax.f32 %v853_v48, 0.0  ;;  %v995_v56 = vpack.c.bf16 %v967_v49, %v966_v53  ;;  %v874_v60 = vadd.f32 %v1887_v50, %v2429_v27 }
 0x1bc   : > { %v865_v54 = vpop.f32.mrf.mxu1 }
 0x1bd   : > { %v994_v55 = vpack.c.bf16 %v965_v52, %v964_v51  ;;  %1960 = vmatpush3.bf16.msra.mxu0 %v2097_v35  ;;  %v866_v58 = vadd.f32 %v2429_v27, %v865_v54  ;;  %v970_v3 = vmax.f32 %v874_v60, 0.0 }
 0x1be   : > { %v1888_v57 = vpop.f32.mrf.mxu1  ;;  %1961 = vmatprep.subr.bf16.mxu0 %v2098_v21 }
 0x1bf   : > { %v877_v59 = vadd.f32 %v1888_v57, %v2429_v27  ;;  %1929 = vmatprep.mubr.bf16.mxu0 %v994_v55  ;;  %v968_v1 = vmax.f32 %v866_v58, 0.0 }
 0x1c0   : > { %v868_v61 = vpop.f32.mrf.mxu1  ;;  %1930 = vmatmul.mubr.bf16.gmra.mxu0 %v995_v56 }
 0x1c1   : > { %v869_v62 = vadd.f32 %v2429_v27, %v868_v61  ;;  %1962 = vmatpush3.bf16.msra.mxu0 %v2098_v21  ;;  %v971_v63 = vmax.f32 %v877_v59, 0.0 }
 0x1c2   : > { %v1891_v0 = vpop.f32.mrf.mxu1  ;;  %1963 = vmatprep.subr.bf16.mxu0 %v2408_v22 }
 0x1c3   : > { %v969_v2 = vmax.f32 %v869_v62, 0.0  ;;  %v997_v6 = vpack.c.bf16 %v971_v63, %v970_v3  ;;  %v890_v10 = vadd.f32 %v1891_v0, %v2429_v27 }
 0x1c4   : > { %v881_v4 = vpop.f32.mrf.mxu1 }
 0x1c5   : > { %v996_v5 = vpack.c.bf16 %v969_v2, %v968_v1  ;;  %1964 = vmatpush3.bf16.msra.mxu0 %v2408_v22  ;;  %v882_v8 = vadd.f32 %v2429_v27, %v881_v4  ;;  %v974_v17 = vmax.f32 %v890_v10, 0.0 }
 0x1c6   : > { %v1892_v7 = vpop.f32.mrf.mxu1  ;;  %1965 = vmatprep.subr.bf16.mxu0 %v2414_v23 }
 0x1c7   : > { %v893_v9 = vadd.f32 %v1892_v7, %v2429_v27  ;;  %1933 = vmatprep.mubr.bf16.mxu0 %v996_v5  ;;  %v972_v15 = vmax.f32 %v882_v8, 0.0 }
 0x1c8   : > { %v884_v11 = vpop.f32.mrf.mxu1  ;;  %1934 = vmatmul.mubr.bf16.gmra.mxu0 %v997_v6 }
 0x1c9   : > { %v885_v12 = vadd.f32 %v2429_v27, %v884_v11  ;;  %1966 = vmatpush3.bf16.msra.mxu0 %v2414_v23  ;;  %v975_v13 = vmax.f32 %v893_v9, 0.0 }
 0x1ca   : > { %v1895_v14 = vpop.f32.mrf.mxu1  ;;  %1967 = vmatprep.subr.bf16.mxu0 %v2421_v24 }
 0x1cb   : > { %v973_v16 = vmax.f32 %v885_v12, 0.0  ;;  %v999_v20 = vpack.c.bf16 %v975_v13, %v974_v17  ;;  %v906_v23 = vadd.f32 %v1895_v14, %v2429_v27  ;;  %v2102_v12 = vld [vmem:[%s2644_s7 + $0x8] sm:$0xff]  }
 0x1cc   : > { %v897_v18 = vpop.f32.mrf.mxu1  ;;  %2011 = vmatprep.subr.bf16.mxu1 %v2102_v12 }
 0x1cd   : > { %v998_v19 = vpack.c.bf16 %v973_v16, %v972_v15  ;;  %1968 = vmatpush3.bf16.msra.mxu0 %v2421_v24  ;;  %v898_v21 = vadd.f32 %v2429_v27, %v897_v18  ;;  %v978_v32 = vmax.f32 %v906_v23, 0.0  ;;  %2019 = vmatpush3.bf16.msra.mxu1 %v2102_v12  ;;  %v2478_v15 = vld [vmem:[%s2643_s6] ss:$0 sm:$0xff] }
 0x1ce   : > { %v1896_v35 = vpop.f32.mrf.mxu1  ;;  %1969 = vmatprep.subr.bf16.mxu0 %v2102_v12 }
 0x1cf   : > { %v909_v22 = vadd.f32 %v1896_v35, %v2429_v27  ;;  %1937 = vmatprep.mubr.bf16.mxu0 %v998_v19  ;;  %v976_v30 = vmax.f32 %v898_v21, 0.0 }
 0x1d0   : > { %v900_v25 = vpop.f32.mrf.mxu1  ;;  %1938 = vmatmul.mubr.bf16.gmra.mxu0 %v999_v20 }
 0x1d1   : > { %v901_v26 = vadd.f32 %v2429_v27, %v900_v25  ;;  %v979_v28 = vmax.f32 %v909_v22, 0.0  ;;  %1970 = vmatpush3.bf16.msra.mxu0 %v2102_v12 }
 0x1d2   : > { %v1899_v29 = vpop.f32.mrf.mxu1 }
 0x1d3   : > { %v977_v31 = vmax.f32 %v901_v26, 0.0  ;;  %v1001_v34 = vpack.c.bf16 %v979_v28, %v978_v32  ;;  %v922_v39 = vadd.f32 %v1899_v29, %v2429_v27 }
 0x1d4   : > { %v913_v33 = vpop.f32.mrf.mxu1 }
 0x1d5   : > { %v1000_v24 = vpack.c.bf16 %v977_v31, %v976_v30  ;;  %v914_v37 = vadd.f32 %v2429_v27, %v913_v33  ;;  %v982_v46 = vmax.f32 %v922_v39, 0.0 }
 0x1d6   : > { %v1900_v36 = vpop.f32.mrf.mxu1 }
 0x1d7   : > { %v925_v38 = vadd.f32 %v1900_v36, %v2429_v27  ;;  %1941 = vmatprep.mubr.bf16.mxu0 %v1000_v24  ;;  %v980_v44 = vmax.f32 %v914_v37, 0.0 }
 0x1d8   : > { %v916_v40 = vpop.f32.mrf.mxu1  ;;  %1942 = vmatmul.mubr.bf16.gmra.mxu0 %v1001_v34 }
 0x1d9   : > { %v917_v41 = vadd.f32 %v2429_v27, %v916_v40  ;;  %v983_v42 = vmax.f32 %v925_v38, 0.0 }
 0x1da   : > { %v1903_v43 = vpop.f32.mrf.mxu1 }
 0x1db   : > { %v981_v45 = vmax.f32 %v917_v41, 0.0  ;;  %v1003_v49 = vpack.c.bf16 %v983_v42, %v982_v46  ;;  %v938_v53 = vadd.f32 %v1903_v43, %v2429_v27 }
 0x1dc   : > { %v929_v47 = vpop.f32.mrf.mxu1 }
 0x1dd   : > { %v1002_v48 = vpack.c.bf16 %v981_v45, %v980_v44  ;;  %v930_v51 = vadd.f32 %v2429_v27, %v929_v47  ;;  %v986_v60 = vmax.f32 %v938_v53, 0.0 }
 0x1de   : > { %v1904_v50 = vpop.f32.mrf.mxu1 }
 0x1df   : > { %v941_v52 = vadd.f32 %v1904_v50, %v2429_v27  ;;  %1945 = vmatprep.mubr.bf16.mxu0 %v1002_v48  ;;  %v984_v58 = vmax.f32 %v930_v51, 0.0 }
 0x1e0   : > { %v932_v54 = vpop.f32.mrf.mxu1  ;;  %1946 = vmatmul.mubr.bf16.gmra.mxu0 %v1003_v49 }
 0x1e1   : > { %v933_v55 = vadd.f32 %v2429_v27, %v932_v54  ;;  %v987_v56 = vmax.f32 %v941_v52, 0.0 }
 0x1e2   : > { %v1907_v57 = vpop.f32.mrf.mxu1 }
 0x1e3   : > { %v985_v59 = vmax.f32 %v933_v55, 0.0  ;;  %v1005_v63 = vpack.c.bf16 %v987_v56, %v986_v60  ;;  %v954_v3 = vadd.f32 %v1907_v57, %v2429_v27 }
 0x1e4   : > { %v945_v61 = vpop.f32.mrf.mxu1 }
 0x1e5   : > { %v1004_v62 = vpack.c.bf16 %v985_v59, %v984_v58  ;;  %v946_v1 = vadd.f32 %v2429_v27, %v945_v61  ;;  %v990_v9 = vmax.f32 %v954_v3, 0.0 }
 0x1e6   : > { %v1908_v0 = vpop.f32.mrf.mxu1 }
 0x1e7   : > { %v957_v2 = vadd.f32 %v1908_v0, %v2429_v27  ;;  %1949 = vmatprep.mubr.bf16.mxu0 %v1004_v62  ;;  %v988_v7 = vmax.f32 %v946_v1, 0.0 }
 0x1e8   : > { %v948_v4 = vpop.f32.mrf.mxu1  ;;  %1950 = vmatmul.mubr.bf16.gmra.mxu0 %v1005_v63 }
 0x1e9   : > { %v949_v5 = vadd.f32 %v2429_v27, %v948_v4  ;;  %v991_v6 = vmax.f32 %v957_v2, 0.0  ;;  %v2103_v27 = vld [vmem:[%s2644_s7] sm:$0xff]  }
 0x1ea   : > { %1971 = vmatprep.subr.bf16.mxu0 %v2103_v27  ;;  %2012 = vmatprep.subr.bf16.mxu1 %v2103_v27 }
 0x1eb   : > { %v989_v8 = vmax.f32 %v949_v5, 0.0  ;;  %v1007_v11 = vpack.c.bf16 %v991_v6, %v990_v9  ;;  %1972 = vmatpush3.bf16.msra.mxu0 %v2103_v27  ;;  %2020 = vmatpush3.bf16.msra.mxu1 %v2103_v27 }
 0x1ed   : > { %v1006_v10 = vpack.c.bf16 %v989_v8, %v988_v7 }
 0x1ef   : > { %1953 = vmatprep.mubr.bf16.mxu0 %v1006_v10 }
 0x1f0   : > { %1954 = vmatmul.mubr.bf16.gmra.mxu0 %v1007_v11 }
 0x278   : > { %v1927_v13 = vpop.f32.mrf.mxu0 }
 0x279   : > { %v1122_v19 = vadd.f32 %v1927_v13, %v2478_v15 }
 0x27a   : > { %v1113_v14 = vpop.f32.mrf.mxu0 }
 0x27b   : > { %v1114_v17 = vadd.f32 %v2478_v15, %v1113_v14  ;;  %v1242_v26 = vmax.f32 %v1122_v19, 0.0 }
 0x27c   : > { %v1928_v16 = vpop.f32.mrf.mxu0 }
 0x27d   : > { %v1125_v18 = vadd.f32 %v1928_v16, %v2478_v15  ;;  %v1240_v23 = vmax.f32 %v1114_v17, 0.0 }
 0x27e   : > { %v1116_v20 = vpop.f32.mrf.mxu0 }
 0x27f   : > { %v1117_v35 = vadd.f32 %v2478_v15, %v1116_v20  ;;  %v1243_v21 = vmax.f32 %v1125_v18, 0.0 }
 0x280   : > { %v1931_v22 = vpop.f32.mrf.mxu0 }
 0x281   : > { %v1241_v25 = vmax.f32 %v1117_v35, 0.0  ;;  %v1273_v30 = vpack.c.bf16 %v1243_v21, %v1242_v26  ;;  %v1138_v24 = vadd.f32 %v1931_v22, %v2478_v15 }
 0x282   : > { %v1129_v28 = vpop.f32.mrf.mxu0 }
 0x283   : > { %v1272_v29 = vpack.c.bf16 %v1241_v25, %v1240_v23  ;;  %v1130_v32 = vadd.f32 %v2478_v15, %v1129_v28  ;;  %v1246_v41 = vmax.f32 %v1138_v24, 0.0 }
 0x284   : > { %v1932_v31 = vpop.f32.mrf.mxu0 }
 0x285   : > { %v1141_v33 = vadd.f32 %v1932_v31, %v2478_v15  ;;  %1973 = vmatprep.mubr.bf16.mxu0 %v1272_v29  ;;  %v1244_v39 = vmax.f32 %v1130_v32, 0.0 }
 0x286   : > { %v1132_v34 = vpop.f32.mrf.mxu0  ;;  %1974 = vmatmul.mubr.bf16.vlgmr.msra.gmra.mxu0 %v1273_v30 }
 0x287   : > { %v1133_v36 = vadd.f32 %v2478_v15, %v1132_v34  ;;  %v1247_v37 = vmax.f32 %v1141_v33, 0.0 }
 0x288   : > { %v1935_v38 = vpop.f32.mrf.mxu0 }
 0x289   : > { %v1245_v40 = vmax.f32 %v1133_v36, 0.0  ;;  %v1275_v44 = vpack.c.bf16 %v1247_v37, %v1246_v41  ;;  %v1154_v48 = vadd.f32 %v1935_v38, %v2478_v15 }
 0x28a   : > { %v1145_v42 = vpop.f32.mrf.mxu0 }
 0x28b   : > { %v1274_v43 = vpack.c.bf16 %v1245_v40, %v1244_v39  ;;  %v1146_v46 = vadd.f32 %v2478_v15, %v1145_v42  ;;  %v1250_v55 = vmax.f32 %v1154_v48, 0.0 }
 0x28c   : > { %v1936_v45 = vpop.f32.mrf.mxu0 }
 0x28d   : > { %v1157_v47 = vadd.f32 %v1936_v45, %v2478_v15  ;;  %1977 = vmatprep.mubr.bf16.mxu1 %v1274_v43  ;;  %v1248_v53 = vmax.f32 %v1146_v46, 0.0 }
 0x28e   : > { %v1148_v49 = vpop.f32.mrf.mxu0  ;;  %1978 = vmatmul.mubr.bf16.vlgmr.msra.gmra.mxu1 %v1275_v44 }
 0x28f   : > { %v1149_v50 = vadd.f32 %v2478_v15, %v1148_v49  ;;  %v1251_v51 = vmax.f32 %v1157_v47, 0.0 }
 0x290   : > { %v1939_v52 = vpop.f32.mrf.mxu0 }
 0x291   : > { %v1249_v54 = vmax.f32 %v1149_v50, 0.0  ;;  %v1277_v58 = vpack.c.bf16 %v1251_v51, %v1250_v55  ;;  %v1170_v62 = vadd.f32 %v1939_v52, %v2478_v15 }
 0x292   : > { %v1161_v56 = vpop.f32.mrf.mxu0 }
 0x293   : > { %v1276_v57 = vpack.c.bf16 %v1249_v54, %v1248_v53  ;;  %v1162_v60 = vadd.f32 %v2478_v15, %v1161_v56  ;;  %v1254_v5 = vmax.f32 %v1170_v62, 0.0 }
 0x294   : > { %v1940_v59 = vpop.f32.mrf.mxu0 }
 0x295   : > { %v1173_v61 = vadd.f32 %v1940_v59, %v2478_v15  ;;  %1981 = vmatprep.mubr.bf16.mxu1 %v1276_v57  ;;  %v1252_v3 = vmax.f32 %v1162_v60, 0.0 }
 0x296   : > { %v1164_v63 = vpop.f32.mrf.mxu0  ;;  %1982 = vmatmul.mubr.bf16.gmra.mxu1 %v1277_v58 }
 0x297   : > { %v1165_v0 = vadd.f32 %v2478_v15, %v1164_v63  ;;  %v1255_v1 = vmax.f32 %v1173_v61, 0.0 }
 0x298   : > { %v1943_v2 = vpop.f32.mrf.mxu0 }
 0x299   : > { %v1253_v4 = vmax.f32 %v1165_v0, 0.0  ;;  %v1279_v8 = vpack.c.bf16 %v1255_v1, %v1254_v5  ;;  %v1186_v12 = vadd.f32 %v1943_v2, %v2478_v15  ;;  %v2516_v0 = vld [vmem:[%s2645_s8] ss:$0 sm:$0xff] }
 0x29a   : > { %v1177_v6 = vpop.f32.mrf.mxu0 }
 0x29b   : > { %v1278_v7 = vpack.c.bf16 %v1253_v4, %v1252_v3  ;;  %v1178_v10 = vadd.f32 %v2478_v15, %v1177_v6  ;;  %v1258_v19 = vmax.f32 %v1186_v12, 0.0 }
 0x29c   : > { %v1944_v9 = vpop.f32.mrf.mxu0 }
 0x29d   : > { %v1189_v11 = vadd.f32 %v1944_v9, %v2478_v15  ;;  %1985 = vmatprep.mubr.bf16.mxu1 %v1278_v7  ;;  %v1256_v17 = vmax.f32 %v1178_v10, 0.0 }
 0x29e   : > { %v1180_v27 = vpop.f32.mrf.mxu0  ;;  %1986 = vmatmul.mubr.bf16.gmra.mxu1 %v1279_v8 }
 0x29f   : > { %v1181_v13 = vadd.f32 %v2478_v15, %v1180_v27  ;;  %v1259_v14 = vmax.f32 %v1189_v11, 0.0 }
 0x2a0   : > { %v1947_v16 = vpop.f32.mrf.mxu0 }
 0x2a1   : > { %v1257_v18 = vmax.f32 %v1181_v13, 0.0  ;;  %v1281_v21 = vpack.c.bf16 %v1259_v14, %v1258_v19  ;;  %v1202_v26 = vadd.f32 %v1947_v16, %v2478_v15 }
 0x2a2   : > { %v1193_v20 = vpop.f32.mrf.mxu0 }
 0x2a3   : > { %v1280_v35 = vpack.c.bf16 %v1257_v18, %v1256_v17  ;;  %v1194_v23 = vadd.f32 %v2478_v15, %v1193_v20  ;;  %v1262_v24 = vmax.f32 %v1202_v26, 0.0 }
 0x2a4   : > { %v1948_v22 = vpop.f32.mrf.mxu0 }
 0x2a5   : > { %v1205_v25 = vadd.f32 %v1948_v22, %v2478_v15  ;;  %1989 = vmatprep.mubr.bf16.mxu1 %v1280_v35  ;;  %v1260_v32 = vmax.f32 %v1194_v23, 0.0 }
 0x2a6   : > { %v1196_v28 = vpop.f32.mrf.mxu0  ;;  %1990 = vmatmul.mubr.bf16.gmra.mxu1 %v1281_v21 }
 0x2a7   : > { %v1197_v29 = vadd.f32 %v2478_v15, %v1196_v28  ;;  %v1263_v30 = vmax.f32 %v1205_v25, 0.0 }
 0x2a8   : > { %v1951_v31 = vpop.f32.mrf.mxu0 }
 0x2a9   : > { %v1261_v33 = vmax.f32 %v1197_v29, 0.0  ;;  %v1283_v37 = vpack.c.bf16 %v1263_v30, %v1262_v24  ;;  %v1218_v41 = vadd.f32 %v1951_v31, %v2478_v15 }
 0x2aa   : > { %v1209_v34 = vpop.f32.mrf.mxu0 }
 0x2ab   : > { %v1282_v36 = vpack.c.bf16 %v1261_v33, %v1260_v32  ;;  %v1210_v39 = vadd.f32 %v2478_v15, %v1209_v34  ;;  %v1266_v48 = vmax.f32 %v1218_v41, 0.0 }
 0x2ac   : > { %v1952_v38 = vpop.f32.mrf.mxu0 }
 0x2ad   : > { %v1221_v40 = vadd.f32 %v1952_v38, %v2478_v15  ;;  %1993 = vmatprep.mubr.bf16.mxu1 %v1282_v36  ;;  %v1264_v46 = vmax.f32 %v1210_v39, 0.0 }
 0x2ae   : > { %v1212_v42 = vpop.f32.mrf.mxu0  ;;  %1994 = vmatmul.mubr.bf16.gmra.mxu1 %v1283_v37 }
 0x2af   : > { %v1213_v43 = vadd.f32 %v2478_v15, %v1212_v42  ;;  %v1267_v44 = vmax.f32 %v1221_v40, 0.0 }
 0x2b0   : > { %v1955_v45 = vpop.f32.mrf.mxu0 }
 0x2b1   : > { %v1265_v47 = vmax.f32 %v1213_v43, 0.0  ;;  %v1285_v51 = vpack.c.bf16 %v1267_v44, %v1266_v48  ;;  %v1234_v55 = vadd.f32 %v1955_v45, %v2478_v15 }
 0x2b2   : > { %v1225_v49 = vpop.f32.mrf.mxu0 }
 0x2b3   : > { %v1284_v50 = vpack.c.bf16 %v1265_v47, %v1264_v46  ;;  %v1226_v53 = vadd.f32 %v2478_v15, %v1225_v49  ;;  %v1270_v61 = vmax.f32 %v1234_v55, 0.0 }
 0x2b4   : > { %v1956_v52 = vpop.f32.mrf.mxu0 }
 0x2b5   : > { %v1237_v54 = vadd.f32 %v1956_v52, %v2478_v15  ;;  %1997 = vmatprep.mubr.bf16.mxu1 %v1284_v50  ;;  %v1268_v59 = vmax.f32 %v1226_v53, 0.0 }
 0x2b6   : > { %v1228_v56 = vpop.f32.mrf.mxu0  ;;  %1998 = vmatmul.mubr.bf16.gmra.mxu1 %v1285_v51 }
 0x2b7   : > { %v1229_v57 = vadd.f32 %v2478_v15, %v1228_v56  ;;  %v1271_v58 = vmax.f32 %v1237_v54, 0.0 }
 0x2b9   : > { %v1269_v60 = vmax.f32 %v1229_v57, 0.0  ;;  %v1287_v63 = vpack.c.bf16 %v1271_v58, %v1270_v61 }
 0x2bb   : > { %v1286_v62 = vpack.c.bf16 %v1269_v60, %v1268_v59 }
 0x2bd   : > { %2001 = vmatprep.mubr.bf16.mxu1 %v1286_v62 }
 0x2be   : > { %2002 = vmatmul.mubr.bf16.gmra.mxu1 %v1287_v63 }
 0x346   : > { %v1975_v1 = vpop.f32.mrf.mxu0 }
 0x347   : > { %v1402_v2 = vadd.f32 %v1975_v1, %v2516_v0 }
 0x348   : > { %v1393_v15 = vpop.f32.mrf.mxu0 }
 0x349   : > { %v1522_v3 = vmax.f32 %v1402_v2, 0.0  ;;  %v1394_v4 = vadd.f32 %v2516_v0, %v1393_v15 }
 0x34a   : > { %v1976_v5 = vpop.f32.mrf.mxu0 }
 0x34b   : > { %1554 = vst [vmem:[%s2522_s28 + $0x10] sm:$0xff] %v1522_v3  ;;  %v1520_v6 = vmax.f32 %v1394_v4, 0.0  ;;  %v1405_v7 = vadd.f32 %v1976_v5, %v2516_v0 }
 0x34c   : > { %v1396_v8 = vpop.f32.mrf.mxu0 }
 0x34d   : > { %1552 = vst [vmem:[%s2522_s28] sm:$0xff] %v1520_v6  ;;  %v1523_v9 = vmax.f32 %v1405_v7, 0.0  ;;  %v1397_v10 = vadd.f32 %v2516_v0, %v1396_v8 }
 0x34e   : > { %v1979_v11 = vpop.f32.mrf.mxu1 }
 0x34f   : > { %1555 = vst [vmem:[%s2522_s28 + $0x18] sm:$0xff] %v1523_v9  ;;  %v1521_v12 = vmax.f32 %v1397_v10, 0.0  ;;  %v1418_v27 = vadd.f32 %v1979_v11, %v2516_v0 }
 0x350   : > { %v1409_v13 = vpop.f32.mrf.mxu1 }
 0x351   : > { %1553 = vst [vmem:[%s2522_s28 + $0x8] sm:$0xff] %v1521_v12  ;;  %v1526_v14 = vmax.f32 %v1418_v27, 0.0  ;;  %v1410_v16 = vadd.f32 %v2516_v0, %v1409_v13 }
 0x352   : > { %v1980_v17 = vpop.f32.mrf.mxu1 }
 0x353   : > { %1558 = vst [vmem:[%s2522_s28 + $0x30] sm:$0xff] %v1526_v14  ;;  %v1524_v18 = vmax.f32 %v1410_v16, 0.0  ;;  %v1421_v19 = vadd.f32 %v1980_v17, %v2516_v0 }
 0x354   : > { %v1412_v20 = vpop.f32.mrf.mxu1 }
 0x355   : > { %1556 = vst [vmem:[%s2522_s28 + $0x20] sm:$0xff] %v1524_v18  ;;  %v1527_v35 = vmax.f32 %v1421_v19, 0.0  ;;  %v1413_v21 = vadd.f32 %v2516_v0, %v1412_v20 }
 0x356   : > { %v1983_v22 = vpop.f32.mrf.mxu1 }
 0x357   : > { %1559 = vst [vmem:[%s2522_s28 + $0x38] sm:$0xff] %v1527_v35  ;;  %v1525_v23 = vmax.f32 %v1413_v21, 0.0  ;;  %v1434_v25 = vadd.f32 %v1983_v22, %v2516_v0 }
 0x358   : > { %v1425_v26 = vpop.f32.mrf.mxu1 }
 0x359   : > { %1557 = vst [vmem:[%s2522_s28 + $0x28] sm:$0xff] %v1525_v23  ;;  %v1530_v28 = vmax.f32 %v1434_v25, 0.0  ;;  %v1426_v29 = vadd.f32 %v2516_v0, %v1425_v26 }
 0x35a   : > { %v1984_v30 = vpop.f32.mrf.mxu1 }
 0x35b   : > { %1562 = vst [vmem:[%s2522_s28 + $0x50] sm:$0xff] %v1530_v28  ;;  %v1528_v31 = vmax.f32 %v1426_v29, 0.0  ;;  %v1437_v32 = vadd.f32 %v1984_v30, %v2516_v0 }
 0x35c   : > { %v1428_v33 = vpop.f32.mrf.mxu1 }
 0x35d   : > { %1560 = vst [vmem:[%s2522_s28 + $0x40] sm:$0xff] %v1528_v31  ;;  %v1531_v24 = vmax.f32 %v1437_v32, 0.0  ;;  %v1429_v34 = vadd.f32 %v2516_v0, %v1428_v33 }
 0x35e   : > { %v1987_v36 = vpop.f32.mrf.mxu1 }
 0x35f   : > { %1563 = vst [vmem:[%s2522_s28 + $0x58] sm:$0xff] %v1531_v24  ;;  %v1529_v37 = vmax.f32 %v1429_v34, 0.0  ;;  %v1450_v38 = vadd.f32 %v1987_v36, %v2516_v0 }
 0x360   : > { %v1441_v39 = vpop.f32.mrf.mxu1 }
 0x361   : > { %1561 = vst [vmem:[%s2522_s28 + $0x48] sm:$0xff] %v1529_v37  ;;  %v1534_v40 = vmax.f32 %v1450_v38, 0.0  ;;  %v1442_v41 = vadd.f32 %v2516_v0, %v1441_v39 }
 0x362   : > { %v1988_v42 = vpop.f32.mrf.mxu1 }
 0x363   : > { %1566 = vst [vmem:[%s2522_s28 + $0x70] sm:$0xff] %v1534_v40  ;;  %v1532_v43 = vmax.f32 %v1442_v41, 0.0  ;;  %v1453_v44 = vadd.f32 %v1988_v42, %v2516_v0 }
 0x364   : > { %v1444_v45 = vpop.f32.mrf.mxu1 }
 0x365   : > { %1564 = vst [vmem:[%s2522_s28 + $0x60] sm:$0xff] %v1532_v43  ;;  %v1535_v46 = vmax.f32 %v1453_v44, 0.0  ;;  %v1445_v47 = vadd.f32 %v2516_v0, %v1444_v45 }
 0x366   : > { %v1991_v48 = vpop.f32.mrf.mxu1 }
 0x367   : > { %1567 = vst [vmem:[%s2522_s28 + $0x78] sm:$0xff] %v1535_v46  ;;  %v1533_v49 = vmax.f32 %v1445_v47, 0.0  ;;  %v1466_v50 = vadd.f32 %v1991_v48, %v2516_v0 }
 0x368   : > { %v1457_v51 = vpop.f32.mrf.mxu1 }
 0x369   : > { %1565 = vst [vmem:[%s2522_s28 + $0x68] sm:$0xff] %v1533_v49  ;;  %v1538_v52 = vmax.f32 %v1466_v50, 0.0  ;;  %v1458_v53 = vadd.f32 %v2516_v0, %v1457_v51 }
 0x36a   : > { %v1992_v54 = vpop.f32.mrf.mxu1 }
 0x36b   : > { %1570 = vst [vmem:[%s2522_s28 + $0x90] sm:$0xff] %v1538_v52  ;;  %v1536_v55 = vmax.f32 %v1458_v53, 0.0  ;;  %v1469_v56 = vadd.f32 %v1992_v54, %v2516_v0 }
 0x36c   : > { %v1460_v57 = vpop.f32.mrf.mxu1 }
 0x36d   : > { %1568 = vst [vmem:[%s2522_s28 + $0x80] sm:$0xff] %v1536_v55  ;;  %v1539_v58 = vmax.f32 %v1469_v56, 0.0  ;;  %v1461_v59 = vadd.f32 %v2516_v0, %v1460_v57 }
 0x36e   : > { %v1995_v60 = vpop.f32.mrf.mxu1 }
 0x36f   : > { %1571 = vst [vmem:[%s2522_s28 + $0x98] sm:$0xff] %v1539_v58  ;;  %v1537_v61 = vmax.f32 %v1461_v59, 0.0  ;;  %v1482_v62 = vadd.f32 %v1995_v60, %v2516_v0 }
 0x370   : > { %v1473_v63 = vpop.f32.mrf.mxu1 }
 0x371   : > { %1569 = vst [vmem:[%s2522_s28 + $0x88] sm:$0xff] %v1537_v61  ;;  %v1542_v1 = vmax.f32 %v1482_v62, 0.0  ;;  %v1474_v2 = vadd.f32 %v2516_v0, %v1473_v63 }
 0x372   : > { %v1996_v15 = vpop.f32.mrf.mxu1 }
 0x373   : > { %1574 = vst [vmem:[%s2522_s28 + $0xb0] sm:$0xff] %v1542_v1  ;;  %v1540_v3 = vmax.f32 %v1474_v2, 0.0  ;;  %v1485_v4 = vadd.f32 %v1996_v15, %v2516_v0 }
 0x374   : > { %v1476_v5 = vpop.f32.mrf.mxu1 }
 0x375   : > { %1572 = vst [vmem:[%s2522_s28 + $0xa0] sm:$0xff] %v1540_v3  ;;  %v1543_v6 = vmax.f32 %v1485_v4, 0.0  ;;  %v1477_v7 = vadd.f32 %v2516_v0, %v1476_v5 }
 0x376   : > { %v1999_v8 = vpop.f32.mrf.mxu1 }
 0x377   : > { %1575 = vst [vmem:[%s2522_s28 + $0xb8] sm:$0xff] %v1543_v6  ;;  %v1541_v9 = vmax.f32 %v1477_v7, 0.0  ;;  %v1498_v10 = vadd.f32 %v1999_v8, %v2516_v0 }
 0x378   : > { %v1489_v11 = vpop.f32.mrf.mxu1 }
 0x379   : > { %1573 = vst [vmem:[%s2522_s28 + $0xa8] sm:$0xff] %v1541_v9  ;;  %v1546_v12 = vmax.f32 %v1498_v10, 0.0  ;;  %v1490_v27 = vadd.f32 %v2516_v0, %v1489_v11 }
 0x37a   : > { %v2000_v13 = vpop.f32.mrf.mxu1 }
 0x37b   : > { %1578 = vst [vmem:[%s2522_s28 + $0xd0] sm:$0xff] %v1546_v12  ;;  %v1544_v14 = vmax.f32 %v1490_v27, 0.0  ;;  %v1501_v16 = vadd.f32 %v2000_v13, %v2516_v0 }
 0x37c   : > { %v1492_v17 = vpop.f32.mrf.mxu1 }
 0x37d   : > { %1576 = vst [vmem:[%s2522_s28 + $0xc0] sm:$0xff] %v1544_v14  ;;  %v1547_v18 = vmax.f32 %v1501_v16, 0.0  ;;  %v1493_v19 = vadd.f32 %v2516_v0, %v1492_v17 }
 0x37e   : > { %v2003_v20 = vpop.f32.mrf.mxu1 }
 0x37f   : > { %1579 = vst [vmem:[%s2522_s28 + $0xd8] sm:$0xff] %v1547_v18  ;;  %v1545_v35 = vmax.f32 %v1493_v19, 0.0  ;;  %v1514_v21 = vadd.f32 %v2003_v20, %v2516_v0 }
 0x380   : > { %v1505_v22 = vpop.f32.mrf.mxu1 }
 0x381   : > { %1577 = vst [vmem:[%s2522_s28 + $0xc8] sm:$0xff] %v1545_v35  ;;  %v1550_v23 = vmax.f32 %v1514_v21, 0.0  ;;  %v1506_v25 = vadd.f32 %v2516_v0, %v1505_v22 }
 0x382   : > { %v2004_v26 = vpop.f32.mrf.mxu1 }
 0x383   : > { %1582 = vst [vmem:[%s2522_s28 + $0xf0] sm:$0xff] %v1550_v23  ;;  %v1548_v28 = vmax.f32 %v1506_v25, 0.0  ;;  %v1517_v29 = vadd.f32 %v2004_v26, %v2516_v0 }
 0x384   : > { %v1508_v30 = vpop.f32.mrf.mxu1 }
 0x385   : > { %1580 = vst [vmem:[%s2522_s28 + $0xe0] sm:$0xff] %v1548_v28  ;;  %v1551_v31 = vmax.f32 %v1517_v29, 0.0  ;;  %v1509_v32 = vadd.f32 %v2516_v0, %v1508_v30 }
 0x387   : > { %1583 = vst [vmem:[%s2522_s28 + $0xf8] sm:$0xff] %v1551_v31  ;;  %v1549_v33 = vmax.f32 %v1509_v32, 0.0 }
 0x389   : > { %1581 = vst [vmem:[%s2522_s28 + $0xe8] sm:$0xff] %v1549_v33 }
 0x38a   : > { %2117 = shalt.err (!%p2114_p3)
}
 0x38b   : > { %s2118_s23 = scalar_lea.hbm %s2589_s22, 4096  ;;  %s2122_s29 = scalar_lea.hbm %s2646_s9, 8192 }
 0x38c   : > { %p2119_p4 = scmp.ne.s32.totalorder %s2589_s22, %s2118_s23  ;;  %p2123_p9 = scmp.lt.s32.totalorder %s2589_s22, %s2646_s9 }
 0x38d   : > { %p2124_p10 = scmp.lt.s32.totalorder %s2122_s29, %s2118_s23 }
 0x38e   : > { %p2120_p7 = pnand %p2119_p4, %p2257_p5 }
 0x38f   : > { %p2125_p11 = por %p2124_p10, %p2123_p9 }
 0x390   : > { %p2121_p8 = pneg %p2120_p7 }
 0x392   : > { %p2126_p12 = pnand %p2125_p11, %p2121_p8 }
 0x394   : > { %2129 = shalt.err (!%p2126_p12)
}
 0x395   : > { %s2167_s21 = smov 128   ;;  %s2168_s24 = smov 8  }
 0x396   : > { %2021 = dma.vmem_to_hbm [thread:$0]  (%p2257_p5), %s2591_s14, 4096, %s2589_s22, %s2597_s13, %s2167_s21, %s2167_s21, %s2168_s24  }
 0x397 PF: > { %p2027_p13 = scmp.ge.s32.totalorder %s2164_s12, 2  ;;  %s1613_s25 = sand.u32 1, %s2152_s30  }
 0x398   : > { %s1614_s26 = scalar_lea.sflag [#allocation3], %s1613_s25 }
 0x399   : > { %p2024_p0 = pnand %p2027_p13, %p2261_p6 }
 0x39b   : > { %p2025_p1 = pneg %p2024_p0 }
 0x39d   : > { %2147 = dma.done.wait (%p2025_p1), %s1614_s26, 4096  }
 0x39e   : > { %2149 = vsyncadd (%p2025_p1), %s1614_s26, 4294963200  ;;  %p19_p2 = scmp.ge.s32.totalorder %s2244_s15, 4   ;;  %s2649_s30 = smov %s2156_s10 }
 0x39f   : > { %s2650_s10 = smov %s2160_s11  ;;  %s2651_s11 = smov %s2255_s18 }
 0x3a0   : > { %s2652_s12 = smov %s2244_s15  ;;  %21 = sbr.rel (!%p19_p2) target bundleno = 3 (0x3), region = 91 }
 0x3a5   :  { %1619 = vsyncpa [#allocation3], 1 }
 0x3a6   :  { %1621 = vsyncpa [#allocation3 + $0x1], 1 }

</bundles_post_ra>
